<compile_context>
chip_gen: v7x
topology: tpu7x:2x2x1
jax: 0.10.0
libtpu: 0.0.40
codegen_flags: <defaults>
</compile_context>

<pallas_src>
import functools
import math

import jax
import jax.numpy as jnp
from jax import lax
from jax.experimental import pallas as pl
from jax.experimental.pallas import tpu as pltpu


# ---------------- activations (applied inside the kernel) ----------------
def _apply_activation(name, x):
    if name in ("tanh", "Tanh"):
        return jnp.tanh(x)
    elif name in ("relu", "ReLU"):
        return jnp.maximum(x, 0.0)
    elif name in ("lrelu", "LReLU"):
        return jnp.where(x >= 0.0, x, 0.01 * x)
    elif name in ("sigmoid", "Sigmoid"):
        return jax.nn.sigmoid(x)
    elif name in ("softplus", "Softplus"):
        beta = 4.0  # matches nn.Softplus(beta=4) in the spec
        return jax.nn.softplus(beta * x) / beta
    elif name in ("celu", "CeLU"):
        return jnp.where(x >= 0.0, x, jnp.expm1(x))
    elif name in ("swish",):
        return x * jax.nn.sigmoid(x)
    elif name in ("sin",):
        return jnp.sin(x)
    elif name in ("snake",):
        alpha = 0.5
        return x + jnp.sin(alpha * x) ** 2 / alpha
    elif name in ("linear", None):
        return x
    else:
        raise ValueError("Unknown activation function")


def _round_up(x, m):
    return ((x + m - 1) // m) * m


# ---------------- fused MLP kernel ----------------
def _mlp_fused_kernel(x_ref, w_in_ref, b_in_ref, *rest, act_name, n_hidden,
                      matmul_dtype, act_dtype, unroll):
    # x_ref:     (TB, D_in)               input dtype (D_in unpadded, full-dim block)
    # w_in_ref:  (D_in, H_p)              matmul_dtype
    # [w_hid_ref:(n_hidden, H_p, H_p)     matmul_dtype,
    #  b_hid_ref:(n_hidden, 1, H_p)       act_dtype]
    # w_out_ref: (H_p, D_out)             matmul_dtype (D_out unpadded)
    # b_in_ref:  (1, H_p) act_dtype ; b_out_ref: (1, D_out) f32
    # o_ref:     (TB, D_out)              f32
    if n_hidden > 0:
        w_hid_ref, b_hid_ref, w_out_ref, b_out_ref, o_ref = rest
    else:
        w_out_ref, b_out_ref, o_ref = rest

    # Input layer: tiny-K matmul straight on the unpadded D_in (MXU f32 acc).
    x = x_ref[...].astype(matmul_dtype)
    h = jnp.dot(x, w_in_ref[...], preferred_element_type=jnp.float32)
    h = _apply_activation(act_name, h.astype(act_dtype) + b_in_ref[...])

    if n_hidden > 0:
        def layer(k, h):
            hk = jnp.dot(h.astype(matmul_dtype), w_hid_ref[k],
                         preferred_element_type=jnp.float32)
            return _apply_activation(act_name, hk.astype(act_dtype) + b_hid_ref[k])

        if unroll:
            # Small, static layer count -> fully unrolled chain of MXU calls.
            for k in range(n_hidden):
                h = layer(k, h)
        else:
            # Deep nets: bound code size / vreg live ranges with a fori_loop.
            h = lax.fori_loop(0, n_hidden, layer, h)

    # Output layer: tiny-N matmul; bias add + store stay in f32.
    y = jnp.dot(h.astype(matmul_dtype), w_out_ref[...],
                preferred_element_type=jnp.float32)
    o_ref[...] = (y + b_out_ref[...]).astype(o_ref.dtype)


# ---------------- one-time parameter preparation (hoisted out of forward) ----------------
def prepare_mlp_params(params, *, matmul_dtype=jnp.bfloat16, act_dtype=None):
    """Pad / stack / cast the MLP weights ONCE so the per-call forward does no
    wrapper-side weight staging.  Only the neuron (H) axis is zero-padded to a
    lane multiple; D_in / D_out stay exact (full-array dims are exempt from the
    (8,128) BlockSpec rule), so no padded x / y copies ever hit HBM."""
    if act_dtype is None:
        act_dtype = matmul_dtype
    w_in, b_in = params["input_layer"]
    hidden = params["hidden_layers"]
    w_out, b_out = params["output_layer"]
    D_in, H = w_in.shape
    D_out = w_out.shape[1]
    n_hidden = len(hidden)
    assert w_out.shape[0] == H
    H_p = _round_up(H, 128)

    prepared = {
        "meta": dict(D_in=D_in, H=H, H_p=H_p, D_out=D_out, n_hidden=n_hidden,
                     matmul_dtype=matmul_dtype, act_dtype=act_dtype),
        "w_in": jnp.pad(w_in, ((0, 0), (0, H_p - H))).astype(matmul_dtype),
        "b_in": jnp.pad(b_in, (0, H_p - H)).reshape(1, H_p).astype(act_dtype),
        # Zero-padded weight ROWS neutralize the padded activation columns even
        # for activations with act(0) != 0 (sigmoid, softplus, ...).
        "w_out": jnp.pad(w_out, ((0, H_p - H), (0, 0))).astype(matmul_dtype),
        "b_out": b_out.reshape(1, D_out).astype(jnp.float32),
    }
    if n_hidden > 0:
        prepared["w_hid"] = jnp.stack(
            [jnp.pad(w, ((0, H_p - H), (0, H_p - H))) for (w, _) in hidden]
        ).astype(matmul_dtype)
        prepared["b_hid"] = jnp.stack(
            [jnp.pad(b, (0, H_p - H)).reshape(1, H_p) for (_, b) in hidden]
        ).astype(act_dtype)
    return prepared


# ---------------- forward ----------------
def mlp_forward(prepared, x, act_name, *, batch_tile=None, unroll_threshold=8,
                vmem_headroom=1.5):
    """Fused Pallas equivalent of MLP.singe_forward: act(in) -> act(hidden)* -> out."""
    meta = prepared["meta"]
    D_in, H_p, D_out = meta["D_in"], meta["H_p"], meta["D_out"]
    n_hidden = meta["n_hidden"]
    matmul_dtype, act_dtype = meta["matmul_dtype"], meta["act_dtype"]

    B = x.shape[0]
    assert x.shape[1] == D_in

    # Megacore-aware batch tiling: aim for >= 2 grid steps so both v7x
    # TensorCores get work; sublane-aligned; capped at 512 rows per tile.
    if batch_tile is None:
        target = -(-B // 2) if B > 8 else B
        batch_tile = min(512, _round_up(target, 8))
    batch_tile = max(8, _round_up(batch_tile, 8))
    B_p = _round_up(B, batch_tile)
    grid = (B_p // batch_tile,)

    # Batch padding only when actually needed (no feature-axis padding of x).
    xp = x if B_p == B else jnp.pad(x, ((0, B_p - B), (0, 0)))

    # ---- VMEM budget: weights resident once (Buffered(1)), x/out double-buffered.
    mm_b = jnp.dtype(matmul_dtype).itemsize
    act_b = jnp.dtype(act_dtype).itemsize
    x_b = jnp.dtype(x.dtype).itemsize
    weight_bytes = (D_in * H_p + n_hidden * H_p * H_p + H_p * D_out) * mm_b
    bias_bytes = (1 + n_hidden) * H_p * act_b + D_out * 4
    io_bytes = 2 * batch_tile * (D_in * x_b + D_out * 4)
    act_bytes = 4 * batch_tile * H_p * 4          # live h / matmul staging (f32)
    needed = weight_bytes + bias_bytes + io_bytes + act_bytes

    try:
        vmem_cap = int(pltpu.get_tpu_info().vmem_capacity_bytes)
    except Exception:
        vmem_cap = 64 << 20   # v7x per-TC capacity (smallest of supported gens)
    if int(needed * 1.2) > vmem_cap:
        # TODO(synk): stream the (n_hidden, H_p, H_p) weight stack layer-by-layer
        # (pltpu.emit_pipeline / manual double-buffer) for nets exceeding VMEM.
        raise ValueError(
            f"MLP weights + tiles (~{needed / 2**20:.1f} MiB) exceed VMEM capacity "
            f"(~{vmem_cap / 2**20:.0f} MiB); reduce neurons/hidden_layers/batch_tile.")
    vmem_limit = int(min(vmem_cap,
                         max(32 << 20, int(needed * vmem_headroom) + (4 << 20))))

    # Weights/biases: constant index_map -> single-buffered, VMEM-resident.
    resident = dict(pipeline_mode=pl.Buffered(1))
    inputs = [xp, prepared["w_in"], prepared["b_in"]]
    in_specs = [
        pl.BlockSpec((batch_tile, D_in), lambda i: (i, 0)),
        pl.BlockSpec((D_in, H_p), lambda i: (0, 0), **resident),
        pl.BlockSpec((1, H_p), lambda i: (0, 0), **resident),
    ]
    if n_hidden > 0:
        inputs += [prepared["w_hid"], prepared["b_hid"]]
        in_specs += [
            pl.BlockSpec((n_hidden, H_p, H_p), lambda i: (0, 0, 0), **resident),
            pl.BlockSpec((n_hidden, 1, H_p), lambda i: (0, 0, 0), **resident),
        ]
    inputs += [prepared["w_out"], prepared["b_out"]]
    in_specs += [
        pl.BlockSpec((H_p, D_out), lambda i: (0, 0), **resident),
        pl.BlockSpec((1, D_out), lambda i: (0, 0), **resident),
    ]

    kernel = functools.partial(
        _mlp_fused_kernel,
        act_name=act_name,
        n_hidden=n_hidden,
        matmul_dtype=matmul_dtype,
        act_dtype=act_dtype,
        unroll=(n_hidden <= unroll_threshold),
    )

    out = pl.pallas_call(
        kernel,
        out_shape=jax.ShapeDtypeStruct((B_p, D_out), jnp.float32),
        grid_spec=pltpu.PrefetchScalarGridSpec(
            num_scalar_prefetch=0,
            grid=grid,
            in_specs=in_specs,
            out_specs=pl.BlockSpec((batch_tile, D_out), lambda i: (i, 0)),
        ),
        compiler_params=pltpu.CompilerParams(
            dimension_semantics=("parallel",),
            vmem_limit_bytes=vmem_limit,
        ),
    )(*inputs)

    # Feature axis is already exact; drop batch padding only when present.
    return out if B_p == B else out[:B]


# ---------------- MLP parameter init (matches nn.Linear default init) ----------------
def init_linear_params(key, in_features, out_features):
    # PyTorch nn.Linear: W, b ~ U(-1/sqrt(in), 1/sqrt(in)); stored (in, out).
    kw, kb = jax.random.split(key)
    bound = 1.0 / math.sqrt(in_features)
    w = jax.random.uniform(kw, (in_features, out_features), jnp.float32, -bound, bound)
    b = jax.random.uniform(kb, (out_features,), jnp.float32, -bound, bound)
    return w, b


def init_mlp_params(key, input_dimension, output_dimension, hyper_parameters):
    n_hidden_layers = int(hyper_parameters["hidden_layers"])
    neurons = int(hyper_parameters["neurons"])
    keys = jax.random.split(key, 1 + (n_hidden_layers - 1) + 1)
    params = {}
    params["input_layer"] = init_linear_params(keys[0], input_dimension, neurons)
    params["hidden_layers"] = [
        init_linear_params(keys[1 + k], neurons, neurons)
        for k in range(n_hidden_layers - 1)
    ]
    params["output_layer"] = init_linear_params(keys[-1], neurons, output_dimension)
    return params


# ---------------- pure-JAX reference ----------------
def mlp_forward_ref(params, x, act_name):
    w, b = params["input_layer"]
    h = _apply_activation(act_name, x @ w + b)
    for (w, b) in params["hidden_layers"]:
        h = _apply_activation(act_name, h @ w + b)
    w, b = params["output_layer"]
    return h @ w + b


if __name__ == "__main__":
    key = jax.random.PRNGKey(0)
    k_param, k_x = jax.random.split(key)

    # Small shapes consistent with the module's forward: x of shape (batch, input_dim)
    input_dimension = 4
    output_dimension = 2
    hyper_parameters = {"hidden_layers": 3, "neurons": 32, "activation": "tanh"}
    batch = 16  # default tiling -> batch_tile=8, grid=(2,) so both v7x TCs get work

    params = init_mlp_params(k_param, input_dimension, output_dimension, hyper_parameters)
    x = jax.random.normal(k_x, (batch, input_dimension), jnp.float32)
    act_name = str(hyper_parameters["activation"])

    u_ref = mlp_forward_ref(params, x, act_name)

    # Strict check: full-f32 matmul + f32 activations must match the reference tightly.
    prep_f32 = prepare_mlp_params(params, matmul_dtype=jnp.float32, act_dtype=jnp.float32)
    u_f32 = mlp_forward(prep_f32, x, act_name)
    u_f32 = jax.block_until_ready(u_f32)
    assert u_f32.shape == (batch, output_dimension)
    assert jnp.allclose(u_f32, u_ref, atol=1e-5, rtol=1e-5), "Pallas MLP (f32) mismatch"

    # Default fast path: bf16 into the MXU, f32 accumulation, bf16 bias+activation.
    prep_bf16 = prepare_mlp_params(params)  # matmul_dtype = act_dtype = bf16
    u_bf16 = mlp_forward(prep_bf16, x, act_name)
    u_bf16 = jax.block_until_ready(u_bf16)
    assert u_bf16.shape == (batch, output_dimension)
    assert jnp.allclose(u_bf16, u_ref, atol=1e-1, rtol=1e-1), "Pallas MLP (bf16) mismatch"

    print("KERNEL_OK")
</pallas_src>

<mosaic_0001>
module attributes {stable_mosaic.version = 11 : i64} {
  func.func @_mlp_fused_kernel(%arg0: i32, %arg1: memref<8x4xf32, #tpu.memory_space<vmem>>, %arg2: memref<4x128xf32, #tpu.memory_space<vmem>>, %arg3: memref<1x128xf32, #tpu.memory_space<vmem>>, %arg4: memref<2x128x128xf32, #tpu.memory_space<vmem>>, %arg5: memref<2x1x128xf32, #tpu.memory_space<vmem>>, %arg6: memref<128x2xf32, #tpu.memory_space<vmem>>, %arg7: memref<1x2xf32, #tpu.memory_space<vmem>>, %arg8: memref<8x2xf32, #tpu.memory_space<vmem>>) attributes {dimension_semantics = [#tpu.dimension_semantics<parallel>], iteration_bounds = array<i64: 2>, scalar_prefetch = 0 : i64, scratch_operands = 0 : i64, tpu.core_type = #tpu.core_type<tc>, window_params = [{transform_indices = @transform_0, window_bounds = array<i64: 8, 4>}, {pipeline_mode = #tpu.pipeline_mode<synchronous>, transform_indices = @transform_1, window_bounds = array<i64: 4, 128>}, {pipeline_mode = #tpu.pipeline_mode<synchronous>, transform_indices = @transform_2, window_bounds = array<i64: 1, 128>}, {pipeline_mode = #tpu.pipeline_mode<synchronous>, transform_indices = @transform_3, window_bounds = array<i64: 2, 128, 128>}, {pipeline_mode = #tpu.pipeline_mode<synchronous>, transform_indices = @transform_4, window_bounds = array<i64: 2, 1, 128>}, {pipeline_mode = #tpu.pipeline_mode<synchronous>, transform_indices = @transform_5, window_bounds = array<i64: 128, 2>}, {pipeline_mode = #tpu.pipeline_mode<synchronous>, transform_indices = @transform_6, window_bounds = array<i64: 1, 2>}, {transform_indices = @transform_7, window_bounds = array<i64: 8, 2>}]} {
    %c0 = arith.constant 0 : index
    %c0_0 = arith.constant 0 : index
    %0 = vector.load %arg1[%c0, %c0_0] : memref<8x4xf32, #tpu.memory_space<vmem>>, vector<8x4xf32>
    %c0_1 = arith.constant 0 : index
    %c0_2 = arith.constant 0 : index
    %1 = vector.load %arg2[%c0_1, %c0_2] : memref<4x128xf32, #tpu.memory_space<vmem>>, vector<4x128xf32>
    %cst = arith.constant dense<0.000000e+00> : vector<8x128xf32>
    %2 = tpu.matmul %0, %1, %cst {dimension_numbers = #tpu.dot_dimension_numbers<[1], [0], [0], [1], [0, 0, 1, 1], [], []>} : vector<8x4xf32>, vector<4x128xf32>, vector<8x128xf32> -> vector<8x128xf32>
    %c0_3 = arith.constant 0 : index
    %c0_4 = arith.constant 0 : index
    %3 = vector.load %arg3[%c0_3, %c0_4] : memref<1x128xf32, #tpu.memory_space<vmem>>, vector<1x128xf32>
    %4 = vector.broadcast %3 : vector<1x128xf32> to vector<8x128xf32>
    %5 = arith.addf %2, %4 : vector<8x128xf32>
    %6 = math.tanh %5 : vector<8x128xf32>
    %c0_5 = arith.constant 0 : index
    %c0_6 = arith.constant 0 : index
    %c0_7 = arith.constant 0 : index
    %7 = vector.load %arg4[%c0_5, %c0_6, %c0_7] : memref<2x128x128xf32, #tpu.memory_space<vmem>>, vector<1x128x128xf32>
    %8 = vector.shape_cast %7 : vector<1x128x128xf32> to vector<128x128xf32>
    %cst_8 = arith.constant dense<0.000000e+00> : vector<8x128xf32>
    %9 = tpu.matmul %6, %8, %cst_8 {dimension_numbers = #tpu.dot_dimension_numbers<[1], [0], [0], [1], [0, 0, 1, 1], [], []>} : vector<8x128xf32>, vector<128x128xf32>, vector<8x128xf32> -> vector<8x128xf32>
    %c0_9 = arith.constant 0 : index
    %c0_10 = arith.constant 0 : index
    %c0_11 = arith.constant 0 : index
    %10 = vector.load %arg5[%c0_9, %c0_10, %c0_11] : memref<2x1x128xf32, #tpu.memory_space<vmem>>, vector<1x1x128xf32>
    %11 = vector.shape_cast %10 : vector<1x1x128xf32> to vector<1x128xf32>
    %12 = vector.broadcast %11 : vector<1x128xf32> to vector<8x128xf32>
    %13 = arith.addf %9, %12 : vector<8x128xf32>
    %14 = math.tanh %13 : vector<8x128xf32>
    %c1 = arith.constant 1 : index
    %c0_12 = arith.constant 0 : index
    %c0_13 = arith.constant 0 : index
    %15 = vector.load %arg4[%c1, %c0_12, %c0_13] : memref<2x128x128xf32, #tpu.memory_space<vmem>>, vector<1x128x128xf32>
    %16 = vector.shape_cast %15 : vector<1x128x128xf32> to vector<128x128xf32>
    %cst_14 = arith.constant dense<0.000000e+00> : vector<8x128xf32>
    %17 = tpu.matmul %14, %16, %cst_14 {dimension_numbers = #tpu.dot_dimension_numbers<[1], [0], [0], [1], [0, 0, 1, 1], [], []>} : vector<8x128xf32>, vector<128x128xf32>, vector<8x128xf32> -> vector<8x128xf32>
    %c1_15 = arith.constant 1 : index
    %c0_16 = arith.constant 0 : index
    %c0_17 = arith.constant 0 : index
    %18 = vector.load %arg5[%c1_15, %c0_16, %c0_17] : memref<2x1x128xf32, #tpu.memory_space<vmem>>, vector<1x1x128xf32>
    %19 = vector.shape_cast %18 : vector<1x1x128xf32> to vector<1x128xf32>
    %20 = vector.broadcast %19 : vector<1x128xf32> to vector<8x128xf32>
    %21 = arith.addf %17, %20 : vector<8x128xf32>
    %22 = math.tanh %21 : vector<8x128xf32>
    %c0_18 = arith.constant 0 : index
    %c0_19 = arith.constant 0 : index
    %23 = vector.load %arg6[%c0_18, %c0_19] : memref<128x2xf32, #tpu.memory_space<vmem>>, vector<128x2xf32>
    %cst_20 = arith.constant dense<0.000000e+00> : vector<8x2xf32>
    %24 = tpu.matmul %22, %23, %cst_20 {dimension_numbers = #tpu.dot_dimension_numbers<[1], [0], [0], [1], [0, 0, 1, 1], [], []>} : vector<8x128xf32>, vector<128x2xf32>, vector<8x2xf32> -> vector<8x2xf32>
    %c0_21 = arith.constant 0 : index
    %c0_22 = arith.constant 0 : index
    %25 = vector.load %arg7[%c0_21, %c0_22] : memref<1x2xf32, #tpu.memory_space<vmem>>, vector<1x2xf32>
    %26 = vector.broadcast %25 : vector<1x2xf32> to vector<8x2xf32>
    %27 = arith.addf %24, %26 : vector<8x2xf32>
    %c0_23 = arith.constant 0 : index
    %c0_24 = arith.constant 0 : index
    %28 = vector.load %arg8[%c0_23, %c0_24] : memref<8x2xf32, #tpu.memory_space<vmem>>, vector<8x2xf32>
    tpu.vector_store %arg8[%c0_23, %c0_24], %27 {strides = array<i32>} : memref<8x2xf32, #tpu.memory_space<vmem>>, vector<8x2xf32>,
    return
  }
  func.func @transform_0(%arg0: i32) -> (i32, i32) {
    %c0_i32 = arith.constant 0 : i32
    %c0_i32_0 = arith.constant 0 : i32
    return %arg0, %c0_i32 : i32, i32
  }
  func.func @transform_1(%arg0: i32) -> (i32, i32) {
    %c0_i32 = arith.constant 0 : i32
    %c0_i32_0 = arith.constant 0 : i32
    %c0_i32_1 = arith.constant 0 : i32
    return %c0_i32, %c0_i32_0 : i32, i32
  }
  func.func @transform_2(%arg0: i32) -> (i32, i32) {
    %c0_i32 = arith.constant 0 : i32
    %c0_i32_0 = arith.constant 0 : i32
    %c0_i32_1 = arith.constant 0 : i32
    return %c0_i32, %c0_i32_0 : i32, i32
  }
  func.func @transform_3(%arg0: i32) -> (i32, i32, i32) {
    %c0_i32 = arith.constant 0 : i32
    %c0_i32_0 = arith.constant 0 : i32
    %c0_i32_1 = arith.constant 0 : i32
    %c0_i32_2 = arith.constant 0 : i32
    return %c0_i32, %c0_i32_0, %c0_i32_1 : i32, i32, i32
  }
  func.func @transform_4(%arg0: i32) -> (i32, i32, i32) {
    %c0_i32 = arith.constant 0 : i32
    %c0_i32_0 = arith.constant 0 : i32
    %c0_i32_1 = arith.constant 0 : i32
    %c0_i32_2 = arith.constant 0 : i32
    return %c0_i32, %c0_i32_0, %c0_i32_1 : i32, i32, i32
  }
  func.func @transform_5(%arg0: i32) -> (i32, i32) {
    %c0_i32 = arith.constant 0 : i32
    %c0_i32_0 = arith.constant 0 : i32
    %c0_i32_1 = arith.constant 0 : i32
    return %c0_i32, %c0_i32_0 : i32, i32
  }
  func.func @transform_6(%arg0: i32) -> (i32, i32) {
    %c0_i32 = arith.constant 0 : i32
    %c0_i32_0 = arith.constant 0 : i32
    %c0_i32_1 = arith.constant 0 : i32
    return %c0_i32, %c0_i32_0 : i32, i32
  }
  func.func @transform_7(%arg0: i32) -> (i32, i32) {
    %c0_i32 = arith.constant 0 : i32
    %c0_i32_0 = arith.constant 0 : i32
    return %arg0, %c0_i32 : i32, i32
  }
}

</mosaic_0001>

<bundles_post_ra>
// kernel: tpu_custom_call.1
= control target key start
LH: loop header
LB: loop body
LE: loop exit
PB: predicated region body
PF: predicated region fallthrough
CT: control target
= control target key end

     0   :  { %12 = vsyncpa [#allocation3], 0  ;;  %s1096_s24 = smov 0   ;;  %s1255_s0 = inlined_call_operand.vmem [shape: f32[16,4], index: 0, kind: input, shape index: {}]   ;;  %s1256_s1 = inlined_call_operand.vmem [shape: f32[4,128], index: 1, kind: input, shape index: {}]   ;;  %s1257_s2 = inlined_call_operand.vmem [shape: f32[1,128], index: 2, kind: input, shape index: {}]   ;;  %s1258_s3 = inlined_call_operand.hbm [shape: f32[2,128,128], index: 3, kind: input, shape index: {}]   ;;  %s1259_s4 = inlined_call_operand.vmem [shape: f32[2,1,128], index: 4, kind: input, shape index: {}]   ;;  %s1260_s5 = inlined_call_operand.vmem [shape: f32[128,2], index: 5, kind: input, shape index: {}]   ;;  %s1261_s6 = inlined_call_operand.vmem [shape: f32[1,2], index: 6, kind: input, shape index: {}]   ;;  %s1262_s7 = inlined_call_operand.vmem [shape: f32[16,2], index: 7, kind: output, shape index: {}]  }
   0x1 LB: > { %s1102_s25 = sadd.s32 4294967295, %s1048_s24   ;;  %p729_p0 = scmp.ge.s32.totalorder %s1048_s24, 1  ;;  %s1048_s24 = sphi %s1096_s24, %s18_s24  }
   0x2   : > { %p201_p1 = scmp.lt.s32.totalorder %s1048_s24, 3  ;;  %s1050_s26 = smov [#allocation2]  }
   0x3   : > { %s219_s27 = sshll.u32 %s1050_s26, 4  ;;  %p1263_p3 = scmp.eq.s32.totalorder %s1102_s25, 0  ;;  %s220_s27 = int_to_ptr.vmem [resolvable:$true] %s219_s27 }
   0x4   : > { %p1106_p2 = pnand %p729_p0, %p201_p1  ;;  %s1010_s9 = scalar_lea.hbm %s1258_s3, 4096 }
   0x5   : > { %p1011_p6 = scmp.ne.s32.totalorder %s1258_s3, %s1010_s9  ;;  %p1017_p10 = scmp.lt.u32.totalorder %s1010_s9, %s1258_s3 }
   0x6   : > { %s1265_s28 = scalar_select %p1106_p2, 1, 0 }
   0x7   : > { %p984_p4 = pneg %p1106_p2 }
   0x9   : > { %p1115_p5 = pnand %p1263_p3, %p984_p4 }
   0xb   : > { %p1012_p7 = pneg %p1115_p5 }
   0xd   : > { %p1013_p8 = pnand %p1012_p7, %p1011_p6 }
   0xf   : > { %p1014_p9 = pneg %p1013_p8 }
  0x11   : > { %p1019_p11 = pnand %p1017_p10, %p1014_p9 }
  0x13   : > { %1022 = shalt.err (!%p1019_p11)
}
  0x14   : > { %s1023_s14 = scalar_lea.vmem %s220_s27, 4096  ;;  %p1031_p1 = scmp.lt.s32.totalorder %s220_s27, %s220_s27 }
  0x15   : > { %p1024_p12 = scmp.ne.s32.totalorder %s220_s27, %s1023_s14  ;;  %p1032_p4 = scmp.lt.s32.totalorder %s1023_s14, %s1023_s14 }
  0x17   : > { %p1026_p13 = pnand %p1024_p12, %p1012_p7  ;;  %p1033_p3 = por %p1032_p4, %p1031_p1 }
  0x19   : > { %p1027_p0 = pneg %p1026_p13 }
  0x1b   : > { %p1034_p2 = pnand %p1033_p3, %p1027_p0 }
  0x1d   : > { %1037 = shalt.err (!%p1034_p2)
}
  0x1e   : > { %s1051_s15 = smov 128   ;;  %s1052_s16 = smov 8  }
  0x1f   : > { %987 = dma.hbm_to_vmem [thread:$0]  (!%p1115_p5), %s1258_s3, 4096, %s220_s27, [#allocation3], %s1051_s15, %s1051_s15, %s1052_s16  }
  0x20   : > { %p1267_p6 = scmp.ne.s32.totalorder %s1265_s28, 0 }
  0x21   : > { %p1268_p8 = scmp.eq.s32.totalorder (!%p1267_p6), %s1102_s25, 0 }
  0x22   : > { %251 = sbr.rel (%p1267_p6) target bundleno = 938 (0x3aa), region = 48 }
  0x29   : > { %1043 = dma.done.wait (%p1268_p8), [#allocation3], 4096   ;;  %p1269_p7 = pmov %p1268_p8 }
  0x2a   : > { %p281_p2 = scmp.lt.s32.totalorder %s1102_s25, 1  ;;  %v1053_v0 = vmov 0.0   ;;  %vm1054_vm0 = vmmov 0   ;;  %v1055_v1 = vmov 0.0|0.0   ;;  %vm302_vm1 = vcmask 1043456   ;;  %v377_v4 = vld [vmem:[#allocation2] sm:$0xff] }
  0x2b   : > { %1045 = vsyncadd (%p1269_p7), [#allocation3], 4294963200  ;;  %798 = vmatprep.subr.mxu0 %v1053_v0  ;;  %800 = vmatprep.mubr.msk.f32.mxu0 %vm1054_vm0, %v1053_v0  ;;  %vm298_vm2 = vcmask 31744   ;;  %v290_v2 = vld [vmem:[%s1256_s1] sm:$0xf]  ;;  %v378_v5 = vld [vmem:[#allocation2 + $0x8] sm:$0xff] }
  0x2c   : > { %s1271_s25 = smov (!%p281_p2, %s1102_s25), 1  ;;  %908 = vmatprep.subr.bf16.mxu1 %v1055_v1  ;;  %835 = vmatprep.mubr.msk.f32.mxu1 %vm1054_vm0, %v1053_v0  ;;  %v379_v6 = vld [vmem:[#allocation2 + $0x10] sm:$0xff]  ;;  %v380_v7 = vld [vmem:[#allocation2 + $0x18] sm:$0xff]  ;;  %v909_v8 = vpack.c.bf16 %v378_v5, %v377_v4  ;;  %v381_v10 = vld [vmem:[#allocation2 + $0x20] sm:$0xff]  ;;  %vm660_vm3 = vcmask 15360  }
  0x2d   : > { %s734_s19 = sshll.u32 %s1271_s25, 3  ;;  %799 = vmatpush3.msk.msra.mxu0 %vm302_vm1, %v290_v2  ;;  %v912_v9 = vpack.c.bf16 %v380_v7, %v379_v6  ;;  %v382_v11 = vld [vmem:[#allocation2 + $0x28] sm:$0xff]  ;;  %v383_v13 = vld [vmem:[#allocation2 + $0x30] sm:$0xff]  ;;  %v384_v14 = vld [vmem:[#allocation2 + $0x38] sm:$0xff] }
  0x2e   : > { %s284_s22 = scalar_lea.vmem %s1255_s0, %s734_s19  ;;  %932 = vmatprep.subr.bf16.mxu0 %v1055_v1  ;;  %910 = vmatpush3.bf16.msra.mxu1 %v909_v8  ;;  %v915_v12 = vpack.c.bf16 %v382_v11, %v381_v10  ;;  %v918_v15 = vpack.c.bf16 %v384_v14, %v383_v13  ;;  %v385_v16 = vld [vmem:[#allocation2 + $0x40] sm:$0xff]  ;;  %v386_v17 = vld [vmem:[#allocation2 + $0x48] sm:$0xff]  ;;  %v387_v19 = vld [vmem:[#allocation2 + $0x50] sm:$0xff]  ;;  %s288_s29 = scalar_lea.vmem %s1262_s7, %s734_s19 }
  0x2f   : > { %v289_v3 = vld [vmem:[%s284_s22] sm:$0xff]  ;;  %911 = vmatprep.subr.bf16.mxu1 %v1055_v1  ;;  %v921_v18 = vpack.c.bf16 %v386_v17, %v385_v16  ;;  %v388_v20 = vld [vmem:[#allocation2 + $0x58] sm:$0xff]  ;;  %v390_v23 = vld [vmem:[#allocation2 + $0x68] sm:$0xff] }
  0x30   : > { %801 = vmatmul.mubr.msk.f32.vlgmr.msra.gmra.mrb[0].mxu0 %vm298_vm2, %v289_v3  ;;  %v924_v21 = vpack.c.bf16 %v388_v20, %v387_v19  ;;  %v389_v22 = vld [vmem:[#allocation2 + $0x60] sm:$0xff]  ;;  %v391_v25 = vld [vmem:[#allocation2 + $0x70] sm:$0xff]  ;;  %v392_v26 = vld [vmem:[#allocation2 + $0x78] sm:$0xff] }
  0x31   : > { %870 = vmatprep.mubr.msk.f32.mxu0 %vm1054_vm0, %v1053_v0  ;;  %v927_v24 = vpack.c.bf16 %v390_v23, %v389_v22  ;;  %v930_v27 = vpack.c.bf16 %v392_v26, %v391_v25  ;;  %v472_v28 = vld [vmem:[#allocation2 + $0x80] sm:$0xff]  ;;  %v473_v29 = vld [vmem:[#allocation2 + $0x88] sm:$0xff]  ;;  %v474_v30 = vld [vmem:[#allocation2 + $0x90] sm:$0xff] }
  0x32   : > { %913 = vmatpush3.bf16.msra.mxu1 %v912_v9  ;;  %v933_v31 = vpack.c.bf16 %v473_v29, %v472_v28  ;;  %v475_v32 = vld [vmem:[#allocation2 + $0x98] sm:$0xff]  ;;  %v476_v34 = vld [vmem:[#allocation2 + $0xa0] sm:$0xff]  ;;  %v477_v35 = vld [vmem:[#allocation2 + $0xa8] sm:$0xff] }
  0x33   : > { %914 = vmatprep.subr.bf16.mxu1 %v1055_v1  ;;  %v936_v33 = vpack.c.bf16 %v475_v32, %v474_v30  ;;  %v939_v36 = vpack.c.bf16 %v477_v35, %v476_v34  ;;  %v478_v37 = vld [vmem:[#allocation2 + $0xb0] sm:$0xff]  ;;  %v479_v38 = vld [vmem:[#allocation2 + $0xb8] sm:$0xff]  ;;  %v480_v40 = vld [vmem:[#allocation2 + $0xc0] sm:$0xff] }
  0x34   : > { %934 = vmatpush3.bf16.msra.mxu0 %v933_v31  ;;  %v942_v39 = vpack.c.bf16 %v479_v38, %v478_v37  ;;  %v481_v41 = vld [vmem:[#allocation2 + $0xc8] sm:$0xff]  ;;  %v736_v43 = vld [vmem:[%s1257_s2] ss:$0 sm:$0xff]  ;;  %v482_v48 = vld [vmem:[#allocation2 + $0xd0] sm:$0xff] }
  0x35   : > { %935 = vmatprep.subr.bf16.mxu0 %v1055_v1  ;;  %v945_v42 = vpack.c.bf16 %v481_v41, %v480_v40  ;;  %v483_v49 = vld [vmem:[#allocation2 + $0xd8] sm:$0xff]  ;;  %v484_v51 = vld [vmem:[#allocation2 + $0xe0] sm:$0xff]  ;;  %v485_v52 = vld [vmem:[#allocation2 + $0xe8] sm:$0xff] }
  0x36   : > { %916 = vmatpush3.bf16.msra.mxu1 %v915_v12  ;;  %v948_v50 = vpack.c.bf16 %v483_v49, %v482_v48  ;;  %v951_v53 = vpack.c.bf16 %v485_v52, %v484_v51  ;;  %v486_v54 = vld [vmem:[#allocation2 + $0xf0] sm:$0xff]  ;;  %v487_v55 = vld [vmem:[#allocation2 + $0xf8] sm:$0xff]  ;;  %v567_v57 = vld [vmem:[%s1260_s5] sm:$0xff] }
  0x37   : > { %917 = vmatprep.subr.bf16.mxu1 %v1055_v1  ;;  %v954_v56 = vpack.c.bf16 %v487_v55, %v486_v54  ;;  %v568_v58 = vld [vmem:[%s1260_s5 + $0x8] sm:$0xff]  ;;  %v569_v59 = vld [vmem:[%s1260_s5 + $0x10] sm:$0xff]  ;;  %v570_v61 = vld [vmem:[%s1260_s5 + $0x18] sm:$0xff] }
  0x38   : > { %937 = vmatpush3.bf16.msra.mxu0 %v936_v33  ;;  %v957_v60 = vpack.c.bf16 %v568_v58, %v567_v57  ;;  %v960_v62 = vpack.c.bf16 %v570_v61, %v569_v59  ;;  %v571_v63 = vld [vmem:[%s1260_s5 + $0x20] sm:$0xff]  ;;  %v573_v3 = vld [vmem:[%s1260_s5 + $0x30] sm:$0xff]  ;;  %v574_v4 = vld [vmem:[%s1260_s5 + $0x38] sm:$0xff] }
  0x39   : > { %938 = vmatprep.subr.bf16.mxu0 %v1055_v1  ;;  %v966_v5 = vpack.c.bf16 %v574_v4, %v573_v3  ;;  %v575_v6 = vld [vmem:[%s1260_s5 + $0x40] sm:$0xff]  ;;  %v576_v7 = vld [vmem:[%s1260_s5 + $0x48] sm:$0xff]  ;;  %v577_v14 = vld [vmem:[%s1260_s5 + $0x50] sm:$0xff] }
  0x3a   : > { %919 = vmatpush3.bf16.msra.mxu1 %v918_v15  ;;  %v969_v8 = vpack.c.bf16 %v576_v7, %v575_v6  ;;  %v739_v9 = vld [vmem:[%s1259_s4] ss:$0 sm:$0xff]  ;;  %v578_v15 = vld [vmem:[%s1260_s5 + $0x58] sm:$0xff]  ;;  %v581_v20 = vld [vmem:[%s1260_s5 + $0x70] sm:$0xff] }
  0x3b   : > { %920 = vmatprep.subr.bf16.mxu1 %v1055_v1  ;;  %v972_v16 = vpack.c.bf16 %v578_v15, %v577_v14  ;;  %v579_v17 = vld [vmem:[%s1260_s5 + $0x60] sm:$0xff] }
  0x3c   : > { %940 = vmatpush3.bf16.msra.mxu0 %v939_v36  ;;  %v741_v23 = vld [vmem:[%s1259_s4 + $0x1] ss:$0 sm:$0xff]  ;;  %v742_v28 = vld [vmem:[%s1261_s6] ss:$0 sm:$0xff] }
  0x3d   : > { %941 = vmatprep.subr.bf16.mxu0 %v1055_v1 }
  0x3e   : > { %922 = vmatpush3.bf16.msra.mxu1 %v921_v18  ;;  %v580_v18 = vld [vmem:[%s1260_s5 + $0x68] sm:$0xff] }
  0x3f   : > { %923 = vmatprep.subr.bf16.mxu1 %v1055_v1  ;;  %v975_v19 = vpack.c.bf16 %v580_v18, %v579_v17 }
  0x40   : > { %943 = vmatpush3.bf16.msra.mxu0 %v942_v39 }
  0x41   : > { %944 = vmatprep.subr.bf16.mxu0 %v1055_v1 }
  0x42   : > { %925 = vmatpush3.bf16.msra.mxu1 %v924_v21  ;;  %v582_v21 = vld [vmem:[%s1260_s5 + $0x78] sm:$0xff] }
  0x43   : > { %926 = vmatprep.subr.bf16.mxu1 %v1055_v1  ;;  %v978_v22 = vpack.c.bf16 %v582_v21, %v581_v20 }
  0x44   : > { %946 = vmatpush3.bf16.msra.mxu0 %v945_v42 }
  0x45   : > { %947 = vmatprep.subr.bf16.mxu0 %v1055_v1 }
  0x46   : > { %928 = vmatpush3.bf16.msra.mxu1 %v927_v24 }
  0x47   : > { %929 = vmatprep.subr.bf16.mxu1 %v1055_v1 }
  0x48   : > { %949 = vmatpush3.bf16.msra.mxu0 %v948_v50 }
  0x49   : > { %950 = vmatprep.subr.bf16.mxu0 %v1055_v1 }
  0x4a   : > { %931 = vmatpush3.bf16.msra.mxu1 %v930_v27 }
  0x4b   : > { %956 = vmatprep.subr.bf16.mxu1 %v1055_v1 }
  0x4c   : > { %952 = vmatpush3.bf16.msra.mxu0 %v951_v53 }
  0x4d   : > { %953 = vmatprep.subr.bf16.mxu0 %v1055_v1 }
  0x50   : > { %955 = vmatpush3.bf16.msra.mxu0 %v954_v56 }
 0x103   : > { %v372_v44 = vpop.f32.mrb[0].mxu0 }
 0x104   : > { %v373_v45 = vadd.f32 %v736_v43, %v372_v44  ;;  %v802_v46 = vpop.f32.mrb[1].mxu0 }
 0x106   : > { %1004 = vtanh.f32 %v373_v45 }
 0x110   : > { %v1005_v47 = vpop.eup %1004 }
 0x111   : > { %836 = vmatmul.mubr.f32.vlgmr.msra.gmra.mrb[0].mxu1 %v1005_v47 }
 0x112   : > { %905 = vmatprep.mubr.msk.f32.mxu1 %vm1054_vm0, %v1053_v0  ;;  %958 = vmatpush3.bf16.msra.mxu1 %v957_v60  ;;  %v572_v0 = vld [vmem:[%s1260_s5 + $0x28] sm:$0xff] }
 0x113   : > { %959 = vmatprep.subr.bf16.mxu1 %v1055_v1  ;;  %v963_v2 = vpack.c.bf16 %v572_v0, %v571_v63 }
 0x116   : > { %961 = vmatpush3.bf16.msra.mxu1 %v960_v62 }
 0x117   : > { %962 = vmatprep.subr.bf16.mxu1 %v1055_v1 }
 0x11a   : > { %964 = vmatpush3.bf16.msra.mxu1 %v963_v2 }
 0x11b   : > { %965 = vmatprep.subr.bf16.mxu1 %v1055_v1 }
 0x11e   : > { %967 = vmatpush3.bf16.msra.mxu1 %v966_v5 }
 0x11f   : > { %968 = vmatprep.subr.bf16.mxu1 %v1055_v1 }
 0x122   : > { %970 = vmatpush3.bf16.msra.mxu1 %v969_v8 }
 0x123   : > { %971 = vmatprep.subr.bf16.mxu1 %v1055_v1 }
 0x126   : > { %973 = vmatpush3.bf16.msra.mxu1 %v972_v16 }
 0x127   : > { %974 = vmatprep.subr.bf16.mxu1 %v1055_v1 }
 0x12a   : > { %976 = vmatpush3.bf16.msra.mxu1 %v975_v19 }
 0x12b   : > { %977 = vmatprep.subr.bf16.mxu1 %v1055_v1 }
 0x12e   : > { %979 = vmatpush3.bf16.msra.mxu1 %v978_v22 }
 0x1e4   : > { %v466_v10 = vpop.f32.mrb[0].mxu1 }
 0x1e5   : > { %v467_v11 = vadd.f32 %v739_v9, %v466_v10  ;;  %v837_v12 = vpop.f32.mrb[1].mxu1 }
 0x1e7   : > { %1006 = vtanh.f32 %v467_v11 }
 0x1f1   : > { %v1007_v13 = vpop.eup %1006 }
 0x1f2   : > { %871 = vmatmul.mubr.f32.vlgmr.msra.gmra.mrb[2].mxu0 %v1007_v13 }
 0x2c5   : > { %v562_v24 = vpop.f32.mrb[2].mxu0 }
 0x2c6   : > { %v563_v25 = vadd.f32 %v741_v23, %v562_v24  ;;  %v872_v26 = vpop.f32.mrb[3].mxu0 }
 0x2c8   : > { %1008 = vtanh.f32 %v563_v25 }
 0x2d2   : > { %v1009_v27 = vpop.eup %1008 }
 0x2d3   : > { %906 = vmatmul.mubr.f32.vlgmr.msra.gmra.mrb[2].mxu1 %v1009_v27 }
 0x3a6   : > { %v656_v1 = vpop.f32.mrb[2].mxu1 }
 0x3a7   : > { %v657_v29 = vadd.f32 %v742_v28, %v656_v1  ;;  %v907_v30 = vpop.f32.mrb[3].mxu1 }
 0x3a9   : > { %661 = vst.msk [vmem:[%s288_s29] sm:$0xff] %vm660_vm3, %v657_v29 }
 0x3aa PF: > { %s18_s24 = sadd.s32 1, %s1048_s24  }
 0x3ab   : > { %p15_p3 = scmp.ge.s32.totalorder %s18_s24, 4  }
 0x3ad   :  { %17 = sbr.rel (!%p15_p3) target bundleno = 1 (0x1), region = 85 }
 0x3b4   :  { %681 = vsyncpa [#allocation3], 1 }
 0x3b5   :  { %683 = vsyncpa [#allocation3 + $0x1], 1 }

</bundles_post_ra>
